<compile_context>
chip_gen: v7x
topology: tpu7x:2x2x1
jax: 0.10.0
libtpu: 0.0.40
codegen_flags: <defaults>
</compile_context>

<pallas_src>
import jax
import jax.numpy as jnp
from jax.experimental import pallas as pl
from jax.experimental.pallas import tpu as pltpu

HIDDEN = 512


def _qz_kernel(x_ref, y_ref, w1x_ref, w1y_ref, w2_ref, w34_ref, b34_ref,
               e_ref, out_ref):
    L = e_ref.shape[1]

    # h1 = relu(x @ W1[:F] + y @ W1[F:])  -- replaces the concat'd first dot.
    xb = x_ref[...].astype(jnp.bfloat16)
    yb = y_ref[...].astype(jnp.bfloat16)
    h1 = (jnp.dot(xb, w1x_ref[...], preferred_element_type=jnp.float32) +
          jnp.dot(yb, w1y_ref[...], preferred_element_type=jnp.float32))
    h1 = jnp.maximum(h1, 0.0)

    # h2 = relu(h1 @ W2)
    h2 = jnp.maximum(
        jnp.dot(h1.astype(jnp.bfloat16), w2_ref[...],
                preferred_element_type=jnp.float32), 0.0)

    # Fused head: one lane-dense N=2L matmul + bias, then split columns.
    a34 = jnp.dot(h2.astype(jnp.bfloat16), w34_ref[...],
                  preferred_element_type=jnp.float32) + b34_ref[...]
    zm = a34[:, :L]
    a4 = a34[:, L:]

    # softplus (PyTorch: beta=1, threshold=20)
    zv = jnp.where(a4 > 20.0, a4, jnp.log1p(jnp.exp(jnp.minimum(a4, 20.0))))

    # reparameterized sample
    z = e_ref[...] * zv + zm

    # Single lane-dense output slab [z | zm | zv].
    out_ref[...] = jnp.concatenate([z, zm, zv], axis=1).astype(out_ref.dtype)


def prepare_params(params, input_features):
    """One-time (B-independent) weight packing: bf16 storage, split W1, fused head."""
    L = params["w3"].shape[1]
    w1 = params["w1"].astype(jnp.bfloat16)
    return {
        "w1x": w1[:input_features],                                   # (F, 512)
        "w1y": w1[input_features:],                                   # (mix, 512)
        "w2": params["w2"].astype(jnp.bfloat16),                      # (512, 512)
        "w34": jnp.concatenate([params["w3"], params["w4"]],
                               axis=1).astype(jnp.bfloat16),          # (512, 2L)
        "b34": jnp.concatenate([params["b3"],
                                params["b4"]]).reshape(1, 2 * L)      # (1, 2L) f32
             .astype(jnp.float32),
        "latent": L,
    }


def q_z_forward(x, y, prepped, noise):
    """x: (B, ...), y: (B, mixtures), noise: (B, L); returns (z, zm, zv)."""
    B = x.shape[0]
    x_flat = x.reshape(B, -1)                       # x.view(B, -1)
    F_in = x_flat.shape[1]
    M = y.shape[1]
    L = prepped["latent"]

    vmem = pl.BlockSpec(memory_space=pltpu.MemorySpace.VMEM)

    weight_bytes = 2 * (prepped["w1x"].size + prepped["w1y"].size +
                        prepped["w2"].size + prepped["w34"].size)
    act_bytes = 4 * (x_flat.size + y.size + noise.size +
                     prepped["b34"].size + B * 3 * L)
    cost = pl.CostEstimate(
        flops=2 * B * ((F_in + M) * HIDDEN + HIDDEN * HIDDEN + HIDDEN * 2 * L),
        transcendentals=2 * B * L,
        bytes_accessed=weight_bytes + act_bytes,
    )

    # TODO(synk): if B grows past a few hundred rows, add grid=(cdiv(B, 128),)
    # tiling over batch (weights resident via index_map lambda i: (0, 0)) and
    # dimension_semantics=("parallel",) so v7x's two TensorCores both work.
    out = pl.pallas_call(
        _qz_kernel,
        out_shape=jax.ShapeDtypeStruct((B, 3 * L), jnp.float32),
        in_specs=[vmem] * 8,
        out_specs=vmem,
        cost_estimate=cost,
    )(x_flat, y, prepped["w1x"], prepped["w1y"], prepped["w2"],
      prepped["w34"], prepped["b34"], noise)

    z = out[:, :L]
    zm = out[:, L:2 * L]
    zv = out[:, 2 * L:]
    return z, zm, zv


def init_params(key, input_features, latent_features, mixtures_count, hidden=HIDDEN):
    """Deterministic synthetic parameters matching nn.Linear shapes (stored (in, out))."""
    k1, k2, k3, k4, k5, k6 = jax.random.split(key, 6)
    in1 = input_features + mixtures_count

    def lin_w(k, fan_in, fan_out):
        bound = 1.0 / jnp.sqrt(fan_in)
        return jax.random.uniform(k, (fan_in, fan_out), jnp.float32, -bound, bound)

    def lin_b(k, fan_in, fan_out):
        bound = 1.0 / jnp.sqrt(fan_in)
        return jax.random.uniform(k, (fan_out,), jnp.float32, -bound, bound)

    return {
        "w1": lin_w(k1, in1, hidden),                 # affine_enc1 (bias=False)
        "w2": lin_w(k2, hidden, hidden),              # affine_enc2 (bias=False)
        "w3": lin_w(k3, hidden, latent_features),     # affine_enc3
        "b3": lin_b(k4, hidden, latent_features),
        "w4": lin_w(k5, hidden, latent_features),     # affine_enc4
        "b4": lin_b(k6, hidden, latent_features),
    }


if __name__ == "__main__":
    # Small shapes consistent with the module: flattened input = 118 features,
    # 10 mixture components -> first-layer fan-in 128; hidden 512; latent 64; batch 8.
    B = 8
    input_features = 118
    latent_features = 64
    mixtures_count = 10

    key = jax.random.PRNGKey(0)
    kx, ky, ke, kp = jax.random.split(key, 4)

    x = jax.random.normal(kx, (B, input_features), jnp.float32)
    y_idx = jax.random.randint(ky, (B,), 0, mixtures_count)
    y = jax.nn.one_hot(y_idx, mixtures_count, dtype=jnp.float32)
    noise = jax.random.normal(ke, (B, latent_features), jnp.float32)  # e ~ N(0,1)

    params = init_params(kp, input_features, latent_features, mixtures_count)
    prepped = prepare_params(params, input_features)

    z, zm, zv = q_z_forward(x, y, prepped, noise)
    jax.block_until_ready((z, zm, zv))

    # Sanity check against a plain-JAX reference using the same bf16 weights
    # (bf16 weight storage is a deliberate perf choice; the kernel math must
    # match a reference computed with identical precision).
    L = latent_features
    h1_ref = jax.nn.relu(
        jnp.dot(x.astype(jnp.bfloat16), prepped["w1x"],
                preferred_element_type=jnp.float32) +
        jnp.dot(y.astype(jnp.bfloat16), prepped["w1y"],
                preferred_element_type=jnp.float32))
    h2_ref = jax.nn.relu(
        jnp.dot(h1_ref.astype(jnp.bfloat16), prepped["w2"],
                preferred_element_type=jnp.float32))
    a34_ref = jnp.dot(h2_ref.astype(jnp.bfloat16), prepped["w34"],
                      preferred_element_type=jnp.float32) + prepped["b34"]
    zm_ref = a34_ref[:, :L]
    a4_ref = a34_ref[:, L:]
    zv_ref = jnp.where(a4_ref > 20.0, a4_ref,
                       jnp.log1p(jnp.exp(jnp.minimum(a4_ref, 20.0))))
    z_ref = noise * zv_ref + zm_ref

    assert z.shape == (B, L) and zm.shape == (B, L) and zv.shape == (B, L)
    assert z.dtype == jnp.float32
    assert jnp.allclose(z, z_ref, atol=2e-3, rtol=2e-3)
    assert jnp.allclose(zm, zm_ref, atol=2e-3, rtol=2e-3)
    assert jnp.allclose(zv, zv_ref, atol=2e-3, rtol=2e-3)
    assert bool(jnp.all(zv >= 0.0))  # softplus output is non-negative

    print("KERNEL_OK")
</pallas_src>

<mosaic_0001>
module attributes {stable_mosaic.version = 11 : i64} {
  func.func @_qz_kernel(%arg0: memref<8x118xf32, #tpu.memory_space<vmem>>, %arg1: memref<8x10xf32, #tpu.memory_space<vmem>>, %arg2: memref<118x512xbf16, #tpu.memory_space<vmem>>, %arg3: memref<10x512xbf16, #tpu.memory_space<vmem>>, %arg4: memref<512x512xbf16, #tpu.memory_space<vmem>>, %arg5: memref<512x128xbf16, #tpu.memory_space<vmem>>, %arg6: memref<1x128xf32, #tpu.memory_space<vmem>>, %arg7: memref<8x64xf32, #tpu.memory_space<vmem>>, %arg8: memref<8x192xf32, #tpu.memory_space<vmem>>) attributes {dimension_semantics = [], scalar_prefetch = 0 : i64, scratch_operands = 0 : i64, tpu.core_type = #tpu.core_type<tc>} {
    %c0 = arith.constant 0 : index
    %c0_0 = arith.constant 0 : index
    %0 = vector.load %arg0[%c0, %c0_0] : memref<8x118xf32, #tpu.memory_space<vmem>>, vector<8x118xf32>
    %1 = arith.truncf %0 : vector<8x118xf32> to vector<8x118xbf16>
    %c0_1 = arith.constant 0 : index
    %c0_2 = arith.constant 0 : index
    %2 = vector.load %arg1[%c0_1, %c0_2] : memref<8x10xf32, #tpu.memory_space<vmem>>, vector<8x10xf32>
    %3 = arith.truncf %2 : vector<8x10xf32> to vector<8x10xbf16>
    %c0_3 = arith.constant 0 : index
    %c0_4 = arith.constant 0 : index
    %4 = vector.load %arg2[%c0_3, %c0_4] : memref<118x512xbf16, #tpu.memory_space<vmem>>, vector<118x512xbf16>
    %cst = arith.constant dense<0.000000e+00> : vector<8x512xf32>
    %5 = tpu.matmul %1, %4, %cst {dimension_numbers = #tpu.dot_dimension_numbers<[1], [0], [0], [1], [0, 0, 1, 1], [], []>} : vector<8x118xbf16>, vector<118x512xbf16>, vector<8x512xf32> -> vector<8x512xf32>
    %c0_5 = arith.constant 0 : index
    %c0_6 = arith.constant 0 : index
    %6 = vector.load %arg3[%c0_5, %c0_6] : memref<10x512xbf16, #tpu.memory_space<vmem>>, vector<10x512xbf16>
    %cst_7 = arith.constant dense<0.000000e+00> : vector<8x512xf32>
    %7 = tpu.matmul %3, %6, %cst_7 {dimension_numbers = #tpu.dot_dimension_numbers<[1], [0], [0], [1], [0, 0, 1, 1], [], []>} : vector<8x10xbf16>, vector<10x512xbf16>, vector<8x512xf32> -> vector<8x512xf32>
    %8 = arith.addf %5, %7 : vector<8x512xf32>
    %cst_8 = arith.constant 0.000000e+00 : f32
    %9 = vector.broadcast %cst_8 : f32 to vector<8x512xf32>
    %10 = arith.maximumf %8, %9 : vector<8x512xf32>
    %11 = arith.truncf %10 : vector<8x512xf32> to vector<8x512xbf16>
    %c0_9 = arith.constant 0 : index
    %c0_10 = arith.constant 0 : index
    %12 = vector.load %arg4[%c0_9, %c0_10] : memref<512x512xbf16, #tpu.memory_space<vmem>>, vector<512x512xbf16>
    %cst_11 = arith.constant dense<0.000000e+00> : vector<8x512xf32>
    %13 = tpu.matmul %11, %12, %cst_11 {dimension_numbers = #tpu.dot_dimension_numbers<[1], [0], [0], [1], [0, 0, 1, 1], [], []>} : vector<8x512xbf16>, vector<512x512xbf16>, vector<8x512xf32> -> vector<8x512xf32>
    %cst_12 = arith.constant 0.000000e+00 : f32
    %14 = vector.broadcast %cst_12 : f32 to vector<8x512xf32>
    %15 = arith.maximumf %13, %14 : vector<8x512xf32>
    %16 = arith.truncf %15 : vector<8x512xf32> to vector<8x512xbf16>
    %c0_13 = arith.constant 0 : index
    %c0_14 = arith.constant 0 : index
    %17 = vector.load %arg5[%c0_13, %c0_14] : memref<512x128xbf16, #tpu.memory_space<vmem>>, vector<512x128xbf16>
    %cst_15 = arith.constant dense<0.000000e+00> : vector<8x128xf32>
    %18 = tpu.matmul %16, %17, %cst_15 {dimension_numbers = #tpu.dot_dimension_numbers<[1], [0], [0], [1], [0, 0, 1, 1], [], []>} : vector<8x512xbf16>, vector<512x128xbf16>, vector<8x128xf32> -> vector<8x128xf32>
    %c0_16 = arith.constant 0 : index
    %c0_17 = arith.constant 0 : index
    %19 = vector.load %arg6[%c0_16, %c0_17] : memref<1x128xf32, #tpu.memory_space<vmem>>, vector<1x128xf32>
    %20 = vector.broadcast %19 : vector<1x128xf32> to vector<8x128xf32>
    %21 = arith.addf %18, %20 : vector<8x128xf32>
    %22 = vector.extract_strided_slice %21 {offsets = [0, 0], sizes = [8, 64], strides = [1, 1]} : vector<8x128xf32> to vector<8x64xf32>
    %23 = vector.extract_strided_slice %21 {offsets = [0, 64], sizes = [8, 64], strides = [1, 1]} : vector<8x128xf32> to vector<8x64xf32>
    %cst_18 = arith.constant 2.000000e+01 : f32
    %24 = vector.broadcast %cst_18 : f32 to vector<8x64xf32>
    %25 = arith.cmpf ogt, %23, %24 : vector<8x64xf32>
    %cst_19 = arith.constant 2.000000e+01 : f32
    %26 = vector.broadcast %cst_19 : f32 to vector<8x64xf32>
    %27 = arith.minimumf %23, %26 : vector<8x64xf32>
    %28 = math.exp %27 : vector<8x64xf32>
    %29 = math.log1p %28 : vector<8x64xf32>
    %30 = arith.select %25, %23, %29 : vector<8x64xi1>, vector<8x64xf32>
    %c0_20 = arith.constant 0 : index
    %c0_21 = arith.constant 0 : index
    %31 = vector.load %arg7[%c0_20, %c0_21] : memref<8x64xf32, #tpu.memory_space<vmem>>, vector<8x64xf32>
    %32 = arith.mulf %31, %30 : vector<8x64xf32>
    %33 = arith.addf %32, %22 : vector<8x64xf32>
    %34 = tpu.concatenate %33, %22, %30 in 1 : vector<8x64xf32>, vector<8x64xf32>, vector<8x64xf32> -> vector<8x192xf32>
    %c0_22 = arith.constant 0 : index
    %c0_23 = arith.constant 0 : index
    %35 = vector.load %arg8[%c0_22, %c0_23] : memref<8x192xf32, #tpu.memory_space<vmem>>, vector<8x192xf32>
    tpu.vector_store %arg8[%c0_22, %c0_23], %34 {strides = array<i32>} : memref<8x192xf32, #tpu.memory_space<vmem>>, vector<8x192xf32>,
    return
  }
}

</mosaic_0001>

<bundles_post_ra>
// kernel: tpu_custom_call.1
= control target key start
LH: loop header
LB: loop body
LE: loop exit
PB: predicated region body
PF: predicated region fallthrough
CT: control target
= control target key end

     0   :  { %13 = vsyncpa [#allocation3], 0  ;;  %s2745_s0 = inlined_call_operand.hbm [shape: f32[8,118], index: 0, kind: input, shape index: {}]   ;;  %s2746_s1 = inlined_call_operand.hbm [shape: f32[8,10], index: 1, kind: input, shape index: {}]   ;;  %s2747_s2 = inlined_call_operand.hbm [shape: bf16[118,512], index: 2, kind: input, shape index: {}]   ;;  %s2748_s3 = inlined_call_operand.hbm [shape: bf16[10,512], index: 3, kind: input, shape index: {}]   ;;  %s2749_s4 = inlined_call_operand.hbm [shape: bf16[512,512], index: 4, kind: input, shape index: {}]   ;;  %s2750_s5 = inlined_call_operand.hbm [shape: bf16[512,128], index: 5, kind: input, shape index: {}]   ;;  %s2751_s6 = inlined_call_operand.vmem [shape: f32[1,128], index: 6, kind: input, shape index: {}]   ;;  %s2752_s7 = inlined_call_operand.vmem [shape: f32[8,64], index: 7, kind: input, shape index: {}]   ;;  %s2753_s8 = inlined_call_operand.hbm [shape: f32[8,192], index: 8, kind: output, shape index: {}]  }
   0x1   :  { %14 = vsyncpa [#allocation6], 0 }
   0x2   :  { %15 = vsyncpa [#allocation9], 0 }
   0x3   :  { %16 = vsyncpa [#allocation12], 0 }
   0x4   :  { %17 = vsyncpa [#allocation4], 0  ;;  %s2570_s27 = smov [#allocation5]   ;;  %s2406_s9 = scalar_lea.hbm %s2746_s1, 128 }
   0x5   :  { %s34_s28 = sshll.u32 %s2570_s27, 4  ;;  %p2407_p0 = scmp.ne.s32.totalorder %s2746_s1, %s2406_s9  ;;  %s35_s28 = int_to_ptr.vmem [resolvable:$true] %s34_s28 }
   0x6   :  { %p2410_p1 = scmp.lt.u32.totalorder %s2406_s9, %s2746_s1 }
   0x8   :  { %p2412_p2 = pnand %p2410_p1, %p2407_p0 }
   0xa   :  { %2415 = shalt.err (!%p2412_p2)
}
   0xb   :  { %s2416_s14 = scalar_lea.vmem %s35_s28, 128  ;;  %p2421_p4 = scmp.lt.s32.totalorder %s35_s28, %s35_s28 }
   0xc   :  { %p2417_p3 = scmp.ne.s32.totalorder %s35_s28, %s2416_s14  ;;  %p2422_p5 = scmp.lt.s32.totalorder %s2416_s14, %s2416_s14 }
   0xe   :  { %p2423_p6 = por %p2422_p5, %p2421_p4 }
  0x10   :  { %p2424_p7 = pnand %p2423_p6, %p2417_p3 }
  0x12   :  { %2427 = shalt.err (!%p2424_p7)
}
  0x13   :  { %37 = dma.hbm_to_vmem [thread:$0]  %s2746_s1, 128, %s35_s28, [#allocation6]  }
  0x14   :  { %s2571_s17 = smov [#allocation8]   ;;  %s2572_s19 = smov [#allocation2]  }
  0x15   :  { %s55_s18 = sshll.u32 %s2571_s17, 4  ;;  %s24_s20 = sshll.u32 %s2572_s19, 4  ;;  %s56_s18 = int_to_ptr.vmem [resolvable:$true] %s55_s18  ;;  %s25_s20 = int_to_ptr.vmem [resolvable:$true] %s24_s20 }
  0x16   :  { %s2428_s23 = scalar_lea.hbm %s2748_s3, 512 }
  0x17   :  { %p2429_p8 = scmp.ne.s32.totalorder %s2748_s3, %s2428_s23  ;;  %p2432_p9 = scmp.lt.u32.totalorder %s2428_s23, %s2748_s3 }
  0x19   :  { %p2434_p10 = pnand %p2432_p9, %p2429_p8 }
  0x1b   :  { %2437 = shalt.err (!%p2434_p10)
}
  0x1c   :  { %s2438_s1 = scalar_lea.vmem %s56_s18, 512  ;;  %p2443_p12 = scmp.lt.s32.totalorder %s56_s18, %s56_s18 }
  0x1d   :  { %p2439_p11 = scmp.ne.s32.totalorder %s56_s18, %s2438_s1  ;;  %p2444_p13 = scmp.lt.s32.totalorder %s2438_s1, %s2438_s1 }
  0x1f   :  { %p2445_p0 = por %p2444_p13, %p2443_p12 }
  0x21   :  { %p2446_p1 = pnand %p2445_p0, %p2439_p11 }
  0x23   :  { %2449 = shalt.err (!%p2446_p1)
}
  0x24   :  { %s2573_s28 = smov 256   ;;  %s2574_s29 = smov 16  }
  0x25   :  { %61 = dma.hbm_to_vmem [thread:$0]  %s2748_s3, 512, %s56_s18, [#allocation9], %s2573_s28, %s2573_s28, %s2574_s29  }
  0x26   :  { %s2450_s12 = scalar_lea.hbm %s2745_s0, 128 }
  0x27   :  { %p2451_p2 = scmp.ne.s32.totalorder %s2745_s0, %s2450_s12  ;;  %p2454_p3 = scmp.lt.u32.totalorder %s2450_s12, %s2745_s0 }
  0x29   :  { %p2456_p4 = pnand %p2454_p3, %p2451_p2 }
  0x2b   :  { %2459 = shalt.err (!%p2456_p4)
}
  0x2c   :  { %s2460_s17 = scalar_lea.vmem %s25_s20, 128  ;;  %p2465_p6 = scmp.lt.s32.totalorder %s25_s20, %s25_s20 }
  0x2d   :  { %p2461_p5 = scmp.ne.s32.totalorder %s25_s20, %s2460_s17  ;;  %p2466_p7 = scmp.lt.s32.totalorder %s2460_s17, %s2460_s17 }
  0x2f   :  { %p2467_p8 = por %p2466_p7, %p2465_p6 }
  0x31   :  { %p2468_p9 = pnand %p2467_p8, %p2461_p5 }
  0x33   :  { %2471 = shalt.err (!%p2468_p9)
}
  0x34   :  { %27 = dma.hbm_to_vmem [thread:$0]  %s2745_s0, 128, %s25_s20, [#allocation3]  }
  0x35   :  { %s2575_s19 = smov [#allocation7]   ;;  %s2576_s22 = smov [#allocation10]  }
  0x36   :  { %s43_s21 = sshll.u32 %s2575_s19, 4  ;;  %s67_s23 = sshll.u32 %s2576_s22, 4  ;;  %s44_s21 = int_to_ptr.vmem [resolvable:$true] %s43_s21  ;;  %s68_s23 = int_to_ptr.vmem [resolvable:$true] %s67_s23 }
  0x37   :  { %s2472_s26 = scalar_lea.hbm %s2747_s2, 3840 }
  0x38   :  { %p2473_p10 = scmp.ne.s32.totalorder %s2747_s2, %s2472_s26  ;;  %p2476_p11 = scmp.lt.u32.totalorder %s2472_s26, %s2747_s2 }
  0x3a   :  { %p2478_p12 = pnand %p2476_p11, %p2473_p10 }
  0x3c   :  { %2481 = shalt.err (!%p2478_p12)
}
  0x3d   :  { %s2482_s0 = scalar_lea.vmem %s44_s21, 3840  ;;  %p2487_p0 = scmp.lt.s32.totalorder %s44_s21, %s44_s21 }
  0x3e   :  { %p2483_p13 = scmp.ne.s32.totalorder %s44_s21, %s2482_s0  ;;  %p2488_p1 = scmp.lt.s32.totalorder %s2482_s0, %s2482_s0 }
  0x40   :  { %p2489_p2 = por %p2488_p1, %p2487_p0 }
  0x42   :  { %p2490_p3 = pnand %p2489_p2, %p2483_p13 }
  0x44   :  { %2493 = shalt.err (!%p2490_p3)
}
  0x45   :  { %49 = dma.hbm_to_vmem [thread:$0]  %s2747_s2, 3840, %s44_s21, [#allocation6], %s2573_s28, %s2573_s28, %s2574_s29  }
  0x46   :  { %s2494_s13 = scalar_lea.hbm %s2749_s4, 16384 }
  0x47   :  { %p2495_p4 = scmp.ne.s32.totalorder %s2749_s4, %s2494_s13  ;;  %p2498_p5 = scmp.lt.u32.totalorder %s2494_s13, %s2749_s4 }
  0x49   :  { %p2500_p6 = pnand %p2498_p5, %p2495_p4 }
  0x4b   :  { %2503 = shalt.err (!%p2500_p6)
}
  0x4c   :  { %s2504_s3 = scalar_lea.vmem %s68_s23, 16384  ;;  %p2509_p8 = scmp.lt.s32.totalorder %s68_s23, %s68_s23 }
  0x4d   :  { %p2505_p7 = scmp.ne.s32.totalorder %s68_s23, %s2504_s3  ;;  %p2510_p9 = scmp.lt.s32.totalorder %s2504_s3, %s2504_s3 }
  0x4f   :  { %p2511_p10 = por %p2510_p9, %p2509_p8 }
  0x51   :  { %p2512_p11 = pnand %p2511_p10, %p2505_p7 }
  0x53   :  { %2515 = shalt.err (!%p2512_p11)
}
  0x54   :  { %73 = dma.hbm_to_vmem [thread:$0]  %s2749_s4, 16384, %s68_s23, [#allocation9], %s2573_s28, %s2573_s28, %s2574_s29  }
  0x55   :  { %s2577_s19 = smov [#allocation11]   ;;  %s2516_s25 = scalar_lea.hbm %s2750_s5, 4096 }
  0x56   :  { %s79_s21 = sshll.u32 %s2577_s19, 4  ;;  %p2517_p12 = scmp.ne.s32.totalorder %s2750_s5, %s2516_s25  ;;  %s80_s21 = int_to_ptr.vmem [resolvable:$true] %s79_s21 }
  0x57   :  { %p2520_p13 = scmp.lt.u32.totalorder %s2516_s25, %s2750_s5 }
  0x59   :  { %p2522_p0 = pnand %p2520_p13, %p2517_p12 }
  0x5b   :  { %2525 = shalt.err (!%p2522_p0)
}
  0x5c   :  { %s2526_s9 = scalar_lea.vmem %s80_s21, 4096  ;;  %p2531_p2 = scmp.lt.s32.totalorder %s80_s21, %s80_s21 }
  0x5d   :  { %p2527_p1 = scmp.ne.s32.totalorder %s80_s21, %s2526_s9  ;;  %p2532_p3 = scmp.lt.s32.totalorder %s2526_s9, %s2526_s9 }
  0x5f   :  { %p2533_p4 = por %p2532_p3, %p2531_p2 }
  0x61   :  { %p2534_p5 = pnand %p2533_p4, %p2527_p1 }
  0x63   :  { %2537 = shalt.err (!%p2534_p5)
}
  0x64   :  { %s2578_s4 = smov 64   ;;  %s2579_s28 = smov 4  }
  0x65   :  { %85 = dma.hbm_to_vmem [thread:$0]  %s2750_s5, 4096, %s80_s21, [#allocation12], %s2578_s4, %s2578_s4, %s2579_s28  }
  0x66   :  { %2560 = dma.done.wait [#allocation3], 128  }
  0x67   :  { %2561 = vsyncadd [#allocation3], 4294967168 }
  0x68   :  { %2562 = dma.done.wait [#allocation6], 3968  }
  0x69   :  { %2563 = vsyncadd [#allocation6], 4294963328 }
  0x6a   :  { %2564 = dma.done.wait [#allocation9], 16896  }
  0x6b   :  { %2565 = vsyncadd [#allocation9], 4294950400 }
  0x6c   :  { %2566 = dma.done.wait [#allocation12], 4096  }
  0x6d   :  { %2567 = vsyncadd [#allocation12], 4294963200  ;;  %v2580_v0 = vmov 0   ;;  %vm167_vm0 = vcmask 1044480   ;;  %v2131_v3 = vld [vmem:[#allocation7 + $0x4] ss:$16 sps:$4 sm:$0xff]  }
  0x6e   :  { %212 = vmatprep.mubr.bf16.mxu0 %v2580_v0  ;;  %253 = vmatprep.mubr.bf16.mxu1 %v2580_v0  ;;  %v2126_v1 = vld [vmem:[#allocation8 + $0x4] ss:$16 sps:$4 sm:$0x1f]   ;;  %v2128_v2 = vld [vmem:[#allocation8] ss:$16 sps:$4 sm:$0x1f]  }
  0x6f   :  { %1853 = vmatprep.subr.msk.bf16.mxu0 %vm167_vm0, %v2126_v1  ;;  %v111_v4 = vld [vmem:[#allocation5] sm:$0xff]  ;;  %v169_v5 = vsel %vm167_vm0, %v2128_v2, 0  ;;  %v2129_v7 = vld [vmem:[#allocation7] ss:$16 sps:$4 sm:$0xff]   ;;  %vm163_vm1 = vcmask 80896   ;;  %vm416_vm2 = vcmask 1042432  }
  0x70   :  { %v112_v6 = vpack.c.bf16 %v111_v4, %v111_v4  ;;  %181 = vmatpush1.bf16.msra.mxu0 %v169_v5  ;;  %v2134_v8 = vld [vmem:[#allocation7 + $0x24] ss:$16 sps:$4 sm:$0xff]   ;;  %v2132_v9 = vld [vmem:[#allocation7 + $0x20] ss:$16 sps:$4 sm:$0xff]   ;;  %v2157_v15 = vld [vmem:[#allocation7 + $0xc] ss:$16 sps:$4 sm:$0xff]  }
  0x71   :  { %429 = vmatprep.subr.bf16.mxu0 %v2131_v3  ;;  %v2137_v10 = vld [vmem:[#allocation7 + $0x44] ss:$16 sps:$4 sm:$0xff]   ;;  %v2150_v11 = vld [vmem:[#allocation8 + $0xc] ss:$16 sps:$4 sm:$0x1f]   ;;  %vm412_vm3 = vcmask 965632  }
  0x72   :  { %v2135_v12 = vld [vmem:[#allocation7 + $0x40] ss:$16 sps:$4 sm:$0xff]   ;;  %v2152_v13 = vld [vmem:[#allocation8 + $0x8] ss:$16 sps:$4 sm:$0x1f]   ;;  %1855 = vmatprep.subr.msk.bf16.mxu1 %vm167_vm0, %v2150_v11  ;;  %vm1827_vm6 = vcmask 523264  }
  0x73   :  { %1854 = vmatmul.mubr.msk.bf16.vlgmr.msra.gmra.mrb[0].mxu0 %vm163_vm1, %v112_v6  ;;  %v2140_v14 = vld [vmem:[#allocation7 + $0x64] ss:$16 sps:$4 sm:$0xff]   ;;  %v175_v16 = vsel %vm167_vm0, %v2152_v13, 0  ;;  %v2155_v17 = vld [vmem:[#allocation7 + $0x8] ss:$16 sps:$4 sm:$0xff]   ;;  %s2581_s10 = smov [#allocation13]  }
  0x74   :  { %430 = vmatpush1.bf16.msra.mxu0 %v2129_v7  ;;  %461 = vmatprep.mubr.bf16.mxu0 %v2580_v0  ;;  %v2138_v18 = vld [vmem:[#allocation7 + $0x60] ss:$16 sps:$4 sm:$0xff]   ;;  %v2160_v19 = vld [vmem:[#allocation7 + $0x2c] ss:$16 sps:$4 sm:$0xff]   ;;  %v2143_v20 = vld [vmem:[#allocation7 + $0x84] ss:$16 sps:$4 sm:$0xff]  }
  0x75   :  { %431 = vmatprep.subr.bf16.mxu0 %v2134_v8  ;;  %222 = vmatpush1.bf16.msra.mxu1 %v175_v16  ;;  %v2158_v21 = vld [vmem:[#allocation7 + $0x28] ss:$16 sps:$4 sm:$0xff]   ;;  %v2141_v22 = vld [vmem:[#allocation7 + $0x80] ss:$16 sps:$4 sm:$0xff]   ;;  %v2163_v23 = vld [vmem:[#allocation7 + $0x4c] ss:$16 sps:$4 sm:$0xff]  }
  0x76   :  { %470 = vmatprep.subr.bf16.mxu1 %v2157_v15  ;;  %v2146_v24 = vld [vmem:[#allocation7 + $0xa4] ss:$16 sps:$4 sm:$0xff]   ;;  %v2144_v25 = vld [vmem:[#allocation7 + $0xa0] ss:$16 sps:$4 sm:$0xff]   ;;  %v2161_v26 = vld [vmem:[#allocation7 + $0x48] ss:$16 sps:$4 sm:$0xff]  }
  0x77   :  { %v2166_v27 = vld [vmem:[#allocation7 + $0x6c] ss:$16 sps:$4 sm:$0xff]   ;;  %v2149_v28 = vld [vmem:[#allocation7 + $0xc4] ss:$16 sps:$4 sm:$0xff]   ;;  %v2147_v30 = vld [vmem:[#allocation7 + $0xc0] ss:$16 sps:$4 sm:$0xff]  }
  0x78   :  { %432 = vmatpush1.bf16.msra.mxu0 %v2132_v9  ;;  %1856 = vmatmul.mubr.msk.bf16.vlgmr.msra.gmra.mrb[0].mxu1 %vm163_vm1, %v112_v6  ;;  %v141_v29 = vld [vmem:[#allocation7 + $0xe0] sm:$0x77]  ;;  %v2164_v31 = vld [vmem:[#allocation7 + $0x68] ss:$16 sps:$4 sm:$0xff]   ;;  %v2169_v32 = vld [vmem:[#allocation7 + $0x8c] ss:$16 sps:$4 sm:$0xff]  }
  0x79   :  { %433 = vmatprep.subr.bf16.mxu0 %v2137_v10  ;;  %471 = vmatpush1.bf16.msra.mxu1 %v2155_v17  ;;  %v1886_v33 = vcombine.high %v141_v29, %v141_v29  ;;  %v1885_v34 = vcombine.low %v141_v29, %v141_v29  ;;  %v109_v35 = vld [vmem:[#allocation2] sm:$0xff]  ;;  %v2167_v36 = vld [vmem:[#allocation7 + $0x88] ss:$16 sps:$4 sm:$0xff]   ;;  %v2172_v37 = vld [vmem:[#allocation7 + $0xac] ss:$16 sps:$4 sm:$0xff]   ;;  %s1837_s11 = sshll.u32 %s2581_s10, 4  ;;  %s1838_s11 = int_to_ptr.vmem [resolvable:$true] %s1837_s11 }
  0x7a   :  { %502 = vmatprep.mubr.bf16.mxu1 %v2580_v0  ;;  %472 = vmatprep.subr.bf16.mxu1 %v2160_v19  ;;  %v2180_v39 = vld [vmem:[#allocation10 + $0x4] ss:$16 sps:$4 sm:$0xff]   ;;  %v2170_v40 = vld [vmem:[#allocation7 + $0xa8] ss:$16 sps:$4 sm:$0xff]   ;;  %v110_v41 = vpack.c.bf16 %v109_v35, %v109_v35  ;;  %v2175_v42 = vld [vmem:[#allocation7 + $0xcc] ss:$16 sps:$4 sm:$0xff]   ;;  %p2543_p7 = scmp.lt.s32.totalorder %s1838_s11, %s1838_s11 }
  0x7b   :  { %v418_v38 = vsel %vm416_vm2, %v1885_v34, 0  ;;  %v142_v43 = vld [vmem:[#allocation7 + $0xe8] sm:$0x77]  ;;  %v2178_v44 = vld [vmem:[#allocation10] ss:$16 sps:$4 sm:$0xff]   ;;  %s2538_s12 = scalar_lea.vmem %s1838_s11, 256 }
  0x7c   :  { %434 = vmatpush1.bf16.msra.mxu0 %v2135_v12  ;;  %v2186_v45 = vld [vmem:[#allocation10 + $0x24] ss:$16 sps:$4 sm:$0xff]   ;;  %v2173_v46 = vld [vmem:[#allocation7 + $0xc8] ss:$16 sps:$4 sm:$0xff]   ;;  %v1888_v47 = vcombine.high %v142_v43, %v142_v43  ;;  %v1887_v48 = vcombine.low %v142_v43, %v142_v43  ;;  %v2184_v49 = vld [vmem:[#allocation10 + $0x20] ss:$16 sps:$4 sm:$0xff]   ;;  %p2539_p6 = scmp.ne.s32.totalorder %s1838_s11, %s2538_s12  ;;  %p2544_p8 = scmp.lt.s32.totalorder %s2538_s12, %s2538_s12 }
  0x7d   :  { %435 = vmatprep.subr.bf16.mxu0 %v2140_v14  ;;  %473 = vmatpush1.bf16.msra.mxu1 %v2158_v21  ;;  %v2192_v50 = vld [vmem:[#allocation10 + $0x44] ss:$16 sps:$4 sm:$0xff]   ;;  %v2183_v51 = vld [vmem:[#allocation10 + $0xc] ss:$16 sps:$4 sm:$0xff]   ;;  %v2190_v53 = vld [vmem:[#allocation10 + $0x40] ss:$16 sps:$4 sm:$0xff]  }
  0x7e   :  { %474 = vmatprep.subr.bf16.mxu1 %v2163_v23  ;;  %v424_v52 = vsel %vm416_vm2, %v1887_v48, 0  ;;  %v2198_v54 = vld [vmem:[#allocation10 + $0x64] ss:$16 sps:$4 sm:$0xff]   ;;  %v2181_v55 = vld [vmem:[#allocation10 + $0x8] ss:$16 sps:$4 sm:$0xff]   ;;  %p2545_p9 = por %p2544_p8, %p2543_p7 }
  0x7f   :  { %v2189_v56 = vld [vmem:[#allocation10 + $0x2c] ss:$16 sps:$4 sm:$0xff]   ;;  %v2196_v57 = vld [vmem:[#allocation10 + $0x60] ss:$16 sps:$4 sm:$0xff]   ;;  %v2204_v58 = vld [vmem:[#allocation10 + $0x84] ss:$16 sps:$4 sm:$0xff]  }
  0x80   :  { %436 = vmatpush1.bf16.msra.mxu0 %v2138_v18  ;;  %v2187_v59 = vld [vmem:[#allocation10 + $0x28] ss:$16 sps:$4 sm:$0xff]   ;;  %v2195_v60 = vld [vmem:[#allocation10 + $0x4c] ss:$16 sps:$4 sm:$0xff]   ;;  %v2202_v61 = vld [vmem:[#allocation10 + $0x80] ss:$16 sps:$4 sm:$0xff]   ;;  %p2546_p10 = pnand %p2545_p9, %p2539_p6 }
  0x81   :  { %437 = vmatprep.subr.bf16.mxu0 %v2143_v20  ;;  %475 = vmatpush1.bf16.msra.mxu1 %v2161_v26  ;;  %v2210_v62 = vld [vmem:[#allocation10 + $0xa4] ss:$16 sps:$4 sm:$0xff]   ;;  %v2193_v63 = vld [vmem:[#allocation10 + $0x48] ss:$16 sps:$4 sm:$0xff]   ;;  %v2201_v0 = vld [vmem:[#allocation10 + $0x6c] ss:$16 sps:$4 sm:$0xff]  }
  0x82   :  { %476 = vmatprep.subr.bf16.mxu1 %v2166_v27  ;;  %v2208_v1 = vld [vmem:[#allocation10 + $0xa0] ss:$16 sps:$4 sm:$0xff]   ;;  %v2216_v2 = vld [vmem:[#allocation10 + $0xc4] ss:$16 sps:$4 sm:$0xff]   ;;  %v2199_v3 = vld [vmem:[#allocation10 + $0x68] ss:$16 sps:$4 sm:$0xff]  }
  0x83   :  { %v2207_v4 = vld [vmem:[#allocation10 + $0x8c] ss:$16 sps:$4 sm:$0xff]   ;;  %v2214_v5 = vld [vmem:[#allocation10 + $0xc0] ss:$16 sps:$4 sm:$0xff]   ;;  %v2205_v6 = vld [vmem:[#allocation10 + $0x88] ss:$16 sps:$4 sm:$0xff]  }
  0x84   :  { %438 = vmatpush1.bf16.msra.mxu0 %v2141_v22  ;;  %v2222_v7 = vld [vmem:[#allocation10 + $0xe4] ss:$16 sps:$4 sm:$0xff]   ;;  %v2213_v8 = vld [vmem:[#allocation10 + $0xac] ss:$16 sps:$4 sm:$0xff]   ;;  %v2220_v9 = vld [vmem:[#allocation10 + $0xe0] ss:$16 sps:$4 sm:$0xff]  }
  0x85   :  { %439 = vmatprep.subr.bf16.mxu0 %v2146_v24  ;;  %477 = vmatpush1.bf16.msra.mxu1 %v2164_v31  ;;  %v2228_v10 = vld [vmem:[#allocation10 + $0x104] ss:$16 sps:$4 sm:$0xff]   ;;  %v2211_v11 = vld [vmem:[#allocation10 + $0xa8] ss:$16 sps:$4 sm:$0xff]   ;;  %v2219_v12 = vld [vmem:[#allocation10 + $0xcc] ss:$16 sps:$4 sm:$0xff]  }
  0x86   :  { %478 = vmatprep.subr.bf16.mxu1 %v2169_v32  ;;  %v2226_v13 = vld [vmem:[#allocation10 + $0x100] ss:$16 sps:$4 sm:$0xff]   ;;  %v2234_v14 = vld [vmem:[#allocation10 + $0x124] ss:$16 sps:$4 sm:$0xff]   ;;  %v2217_v15 = vld [vmem:[#allocation10 + $0xc8] ss:$16 sps:$4 sm:$0xff]  }
  0x87   :  { %v2225_v16 = vld [vmem:[#allocation10 + $0xec] ss:$16 sps:$4 sm:$0xff]   ;;  %v2232_v17 = vld [vmem:[#allocation10 + $0x120] ss:$16 sps:$4 sm:$0xff]   ;;  %v2240_v18 = vld [vmem:[#allocation10 + $0x144] ss:$16 sps:$4 sm:$0xff]  }
  0x88   :  { %440 = vmatpush1.bf16.msra.mxu0 %v2144_v25  ;;  %v2223_v19 = vld [vmem:[#allocation10 + $0xe8] ss:$16 sps:$4 sm:$0xff]   ;;  %v2231_v20 = vld [vmem:[#allocation10 + $0x10c] ss:$16 sps:$4 sm:$0xff]   ;;  %v2238_v21 = vld [vmem:[#allocation10 + $0x140] ss:$16 sps:$4 sm:$0xff]  }
  0x89   :  { %441 = vmatprep.subr.bf16.mxu0 %v2149_v28  ;;  %479 = vmatpush1.bf16.msra.mxu1 %v2167_v36  ;;  %v2246_v22 = vld [vmem:[#allocation10 + $0x164] ss:$16 sps:$4 sm:$0xff]   ;;  %v2229_v23 = vld [vmem:[#allocation10 + $0x108] ss:$16 sps:$4 sm:$0xff]   ;;  %v2237_v24 = vld [vmem:[#allocation10 + $0x12c] ss:$16 sps:$4 sm:$0xff]  }
  0x8a   :  { %480 = vmatprep.subr.bf16.mxu1 %v2172_v37  ;;  %v2244_v25 = vld [vmem:[#allocation10 + $0x160] ss:$16 sps:$4 sm:$0xff]   ;;  %v2252_v26 = vld [vmem:[#allocation10 + $0x184] ss:$16 sps:$4 sm:$0xff]   ;;  %v2235_v27 = vld [vmem:[#allocation10 + $0x128] ss:$16 sps:$4 sm:$0xff]  }
  0x8b   :  { %v2243_v28 = vld [vmem:[#allocation10 + $0x14c] ss:$16 sps:$4 sm:$0xff]   ;;  %v2250_v29 = vld [vmem:[#allocation10 + $0x180] ss:$16 sps:$4 sm:$0xff]   ;;  %v2241_v31 = vld [vmem:[#allocation10 + $0x148] ss:$16 sps:$4 sm:$0xff]  }
  0x8c   :  { %442 = vmatpush1.bf16.msra.mxu0 %v2147_v30  ;;  %v2258_v30 = vld [vmem:[#allocation10 + $0x1a4] ss:$16 sps:$4 sm:$0xff]   ;;  %v2249_v32 = vld [vmem:[#allocation10 + $0x16c] ss:$16 sps:$4 sm:$0xff]   ;;  %v2247_v35 = vld [vmem:[#allocation10 + $0x168] ss:$16 sps:$4 sm:$0xff]  }
  0x8d   :  { %1889 = vmatprep.subr.msk.bf16.mxu0 %vm416_vm2, %v1886_v33  ;;  %481 = vmatpush1.bf16.msra.mxu1 %v2170_v40  ;;  %v2256_v33 = vld [vmem:[#allocation10 + $0x1a0] ss:$16 sps:$4 sm:$0xff]   ;;  %v2264_v34 = vld [vmem:[#allocation10 + $0x1c4] ss:$16 sps:$4 sm:$0xff]   ;;  %v2255_v36 = vld [vmem:[#allocation10 + $0x18c] ss:$16 sps:$4 sm:$0xff]  }
  0x8e   :  { %482 = vmatprep.subr.bf16.mxu1 %v2175_v42  ;;  %v2262_v37 = vld [vmem:[#allocation10 + $0x1c0] ss:$16 sps:$4 sm:$0xff]   ;;  %v2259_v40 = vld [vmem:[#allocation10 + $0x1a8] ss:$16 sps:$4 sm:$0xff]   ;;  %v2270_v43 = vld [vmem:[#allocation10 + $0x1e4] ss:$16 sps:$4 sm:$0xff]  }
  0x8f   :  { %v2265_v42 = vld [vmem:[#allocation10 + $0x1c8] ss:$16 sps:$4 sm:$0xff]   ;;  %v2279_v48 = vld [vmem:[#allocation10 + $0x20c] ss:$16 sps:$4 sm:$0xff]  }
  0x90   :  { %444 = vmatpush1.bf16.msra.mxu0 %v418_v38  ;;  %v2253_v38 = vld [vmem:[#allocation10 + $0x188] ss:$16 sps:$4 sm:$0xff]  }
  0x91   :  { %1287 = vmatprep.subr.bf16.mxu0 %v2180_v39  ;;  %483 = vmatpush1.bf16.msra.mxu1 %v2173_v46  ;;  %v2261_v39 = vld [vmem:[#allocation10 + $0x1ac] ss:$16 sps:$4 sm:$0xff]   ;;  %v2271_v46 = vld [vmem:[#allocation10 + $0x1e8] ss:$16 sps:$4 sm:$0xff]  }
  0x92   :  { %1891 = vmatprep.subr.msk.bf16.mxu1 %vm416_vm2, %v1888_v47  ;;  %v2276_v47 = vld [vmem:[#allocation10 + $0x204] ss:$16 sps:$4 sm:$0xff]  }
  0x93   :  { %1890 = vmatmul.mubr.msk.bf16.vlgmr.msra.gmra.mrb[0].mxu0 %vm412_vm3, %v110_v41 }
  0x94   :  { %1288 = vmatpush1.bf16.msra.mxu0 %v2178_v44  ;;  %v2273_v44 = vld [vmem:[#allocation10 + $0x1ec] ss:$16 sps:$4 sm:$0xff]  }
  0x95   :  { %1289 = vmatprep.subr.bf16.mxu0 %v2186_v45  ;;  %485 = vmatpush1.bf16.msra.mxu1 %v424_v52  ;;  %v2268_v45 = vld [vmem:[#allocation10 + $0x1e0] ss:$16 sps:$4 sm:$0xff]  }
  0x96   :  { %1369 = vmatprep.subr.bf16.mxu1 %v2183_v51 }
  0x98   :  { %1290 = vmatpush1.bf16.msra.mxu0 %v2184_v49  ;;  %1892 = vmatmul.mubr.msk.bf16.vlgmr.msra.gmra.mrb[0].mxu1 %vm412_vm3, %v110_v41  ;;  %v2267_v41 = vld [vmem:[#allocation10 + $0x1cc] ss:$16 sps:$4 sm:$0xff]  }
  0x99   :  { %1291 = vmatprep.subr.bf16.mxu0 %v2192_v50  ;;  %1370 = vmatpush1.bf16.msra.mxu1 %v2181_v55 }
  0x9a   :  { %1371 = vmatprep.subr.bf16.mxu1 %v2189_v56  ;;  %v2274_v56 = vld [vmem:[#allocation10 + $0x200] ss:$16 sps:$4 sm:$0xff]  }
  0x9c   :  { %1292 = vmatpush1.bf16.msra.mxu0 %v2190_v53 }
  0x9d   :  { %1293 = vmatprep.subr.bf16.mxu0 %v2198_v54  ;;  %1372 = vmatpush1.bf16.msra.mxu1 %v2187_v59  ;;  %v2282_v59 = vld [vmem:[#allocation10 + $0x224] ss:$16 sps:$4 sm:$0xff]  }
  0x9e   :  { %1373 = vmatprep.subr.bf16.mxu1 %v2195_v60  ;;  %v2285_v60 = vld [vmem:[#allocation10 + $0x22c] ss:$16 sps:$4 sm:$0xff]  }
  0xa0   :  { %1294 = vmatpush1.bf16.msra.mxu0 %v2196_v57  ;;  %v2277_v57 = vld [vmem:[#allocation10 + $0x208] ss:$16 sps:$4 sm:$0xff]  }
  0xa1   :  { %1295 = vmatprep.subr.bf16.mxu0 %v2204_v58  ;;  %1374 = vmatpush1.bf16.msra.mxu1 %v2193_v63  ;;  %v2288_v63 = vld [vmem:[#allocation10 + $0x244] ss:$16 sps:$4 sm:$0xff]  }
  0xa2   :  { %1375 = vmatprep.subr.bf16.mxu1 %v2201_v0  ;;  %v2291_v0 = vld [vmem:[#allocation10 + $0x24c] ss:$16 sps:$4 sm:$0xff]  }
  0xa4   :  { %1296 = vmatpush1.bf16.msra.mxu0 %v2202_v61  ;;  %v2280_v61 = vld [vmem:[#allocation10 + $0x220] ss:$16 sps:$4 sm:$0xff]  }
  0xa5   :  { %1297 = vmatprep.subr.bf16.mxu0 %v2210_v62  ;;  %1376 = vmatpush1.bf16.msra.mxu1 %v2199_v3  ;;  %v2283_v62 = vld [vmem:[#allocation10 + $0x228] ss:$16 sps:$4 sm:$0xff]  }
  0xa6   :  { %1377 = vmatprep.subr.bf16.mxu1 %v2207_v4  ;;  %v2289_v3 = vld [vmem:[#allocation10 + $0x248] ss:$16 sps:$4 sm:$0xff]  }
  0xa8   :  { %1298 = vmatpush1.bf16.msra.mxu0 %v2208_v1 }
  0xa9   :  { %1299 = vmatprep.subr.bf16.mxu0 %v2216_v2  ;;  %1378 = vmatpush1.bf16.msra.mxu1 %v2205_v6  ;;  %v2286_v2 = vld [vmem:[#allocation10 + $0x240] ss:$16 sps:$4 sm:$0xff]   ;;  %v2297_v6 = vld [vmem:[#allocation10 + $0x26c] ss:$16 sps:$4 sm:$0xff]  }
  0xaa   :  { %1379 = vmatprep.subr.bf16.mxu1 %v2213_v8 }
  0xac   :  { %1300 = vmatpush1.bf16.msra.mxu0 %v2214_v5  ;;  %v2294_v5 = vld [vmem:[#allocation10 + $0x264] ss:$16 sps:$4 sm:$0xff]  }
  0xad   :  { %1301 = vmatprep.subr.bf16.mxu0 %v2222_v7  ;;  %1380 = vmatpush1.bf16.msra.mxu1 %v2211_v11  ;;  %v2292_v11 = vld [vmem:[#allocation10 + $0x260] ss:$16 sps:$4 sm:$0xff]  }
  0xae   :  { %1381 = vmatprep.subr.bf16.mxu1 %v2219_v12  ;;  %v2295_v12 = vld [vmem:[#allocation10 + $0x268] ss:$16 sps:$4 sm:$0xff]  }
  0xb0   :  { %1302 = vmatpush1.bf16.msra.mxu0 %v2220_v9 }
  0xb1   :  { %1303 = vmatprep.subr.bf16.mxu0 %v2228_v10  ;;  %1382 = vmatpush1.bf16.msra.mxu1 %v2217_v15  ;;  %v2298_v15 = vld [vmem:[#allocation10 + $0x280] ss:$16 sps:$4 sm:$0xff]  }
  0xb2   :  { %1383 = vmatprep.subr.bf16.mxu1 %v2225_v16  ;;  %v2301_v16 = vld [vmem:[#allocation10 + $0x288] ss:$16 sps:$4 sm:$0xff]  }
  0xb4   :  { %1304 = vmatpush1.bf16.msra.mxu0 %v2226_v13  ;;  %v2300_v13 = vld [vmem:[#allocation10 + $0x284] ss:$16 sps:$4 sm:$0xff]  }
  0xb5   :  { %1305 = vmatprep.subr.bf16.mxu0 %v2234_v14  ;;  %1384 = vmatpush1.bf16.msra.mxu1 %v2223_v19  ;;  %v2303_v14 = vld [vmem:[#allocation10 + $0x28c] ss:$16 sps:$4 sm:$0xff]   ;;  %v2304_v19 = vld [vmem:[#allocation10 + $0x2a0] ss:$16 sps:$4 sm:$0xff]  }
  0xb6   :  { %1385 = vmatprep.subr.bf16.mxu1 %v2231_v20  ;;  %v2307_v20 = vld [vmem:[#allocation10 + $0x2a8] ss:$16 sps:$4 sm:$0xff]  }
  0xb8   :  { %1306 = vmatpush1.bf16.msra.mxu0 %v2232_v17  ;;  %v2306_v17 = vld [vmem:[#allocation10 + $0x2a4] ss:$16 sps:$4 sm:$0xff]  }
  0xb9   :  { %1307 = vmatprep.subr.bf16.mxu0 %v2240_v18  ;;  %1386 = vmatpush1.bf16.msra.mxu1 %v2229_v23  ;;  %v2309_v18 = vld [vmem:[#allocation10 + $0x2ac] ss:$16 sps:$4 sm:$0xff]   ;;  %v2310_v23 = vld [vmem:[#allocation10 + $0x2c0] ss:$16 sps:$4 sm:$0xff]  }
  0xba   :  { %1387 = vmatprep.subr.bf16.mxu1 %v2237_v24  ;;  %v2313_v24 = vld [vmem:[#allocation10 + $0x2c8] ss:$16 sps:$4 sm:$0xff]  }
  0xbc   :  { %1308 = vmatpush1.bf16.msra.mxu0 %v2238_v21  ;;  %v2312_v21 = vld [vmem:[#allocation10 + $0x2c4] ss:$16 sps:$4 sm:$0xff]  }
  0xbd   :  { %1309 = vmatprep.subr.bf16.mxu0 %v2246_v22  ;;  %1388 = vmatpush1.bf16.msra.mxu1 %v2235_v27  ;;  %v2315_v22 = vld [vmem:[#allocation10 + $0x2cc] ss:$16 sps:$4 sm:$0xff]   ;;  %v2316_v27 = vld [vmem:[#allocation10 + $0x2e0] ss:$16 sps:$4 sm:$0xff]  }
  0xbe   :  { %1389 = vmatprep.subr.bf16.mxu1 %v2243_v28  ;;  %v2319_v28 = vld [vmem:[#allocation10 + $0x2e8] ss:$16 sps:$4 sm:$0xff]  }
  0xc0   :  { %1310 = vmatpush1.bf16.msra.mxu0 %v2244_v25  ;;  %v2318_v25 = vld [vmem:[#allocation10 + $0x2e4] ss:$16 sps:$4 sm:$0xff]  }
  0xc1   :  { %1311 = vmatprep.subr.bf16.mxu0 %v2252_v26  ;;  %1390 = vmatpush1.bf16.msra.mxu1 %v2241_v31  ;;  %v2321_v26 = vld [vmem:[#allocation10 + $0x2ec] ss:$16 sps:$4 sm:$0xff]   ;;  %v2322_v31 = vld [vmem:[#allocation10 + $0x300] ss:$16 sps:$4 sm:$0xff]  }
  0xc2   :  { %1391 = vmatprep.subr.bf16.mxu1 %v2249_v32  ;;  %v2325_v32 = vld [vmem:[#allocation10 + $0x308] ss:$16 sps:$4 sm:$0xff]  }
  0xc4   :  { %1312 = vmatpush1.bf16.msra.mxu0 %v2250_v29  ;;  %v2324_v29 = vld [vmem:[#allocation10 + $0x304] ss:$16 sps:$4 sm:$0xff]  }
  0xc5   :  { %1313 = vmatprep.subr.bf16.mxu0 %v2258_v30  ;;  %1392 = vmatpush1.bf16.msra.mxu1 %v2247_v35  ;;  %v2327_v30 = vld [vmem:[#allocation10 + $0x30c] ss:$16 sps:$4 sm:$0xff]   ;;  %v2328_v35 = vld [vmem:[#allocation10 + $0x320] ss:$16 sps:$4 sm:$0xff]  }
  0xc6   :  { %1393 = vmatprep.subr.bf16.mxu1 %v2255_v36  ;;  %v2331_v36 = vld [vmem:[#allocation10 + $0x328] ss:$16 sps:$4 sm:$0xff]  }
  0xc8   :  { %1314 = vmatpush1.bf16.msra.mxu0 %v2256_v33  ;;  %v2330_v33 = vld [vmem:[#allocation10 + $0x324] ss:$16 sps:$4 sm:$0xff]  }
  0xc9   :  { %1315 = vmatprep.subr.bf16.mxu0 %v2264_v34  ;;  %1394 = vmatpush1.bf16.msra.mxu1 %v2253_v38  ;;  %v2333_v34 = vld [vmem:[#allocation10 + $0x32c] ss:$16 sps:$4 sm:$0xff]  }
  0xca   :  { %1395 = vmatprep.subr.bf16.mxu1 %v2261_v39  ;;  %v2339_v38 = vld [vmem:[#allocation10 + $0x34c] ss:$16 sps:$4 sm:$0xff]   ;;  %v2334_v39 = vld [vmem:[#allocation10 + $0x340] ss:$16 sps:$4 sm:$0xff]  }
  0xcc   :  { %1316 = vmatpush1.bf16.msra.mxu0 %v2262_v37  ;;  %v2336_v37 = vld [vmem:[#allocation10 + $0x344] ss:$16 sps:$4 sm:$0xff]  }
  0xcd   :  { %1396 = vmatpush1.bf16.msra.mxu1 %v2259_v40  ;;  %1317 = vmatprep.subr.bf16.mxu0 %v2270_v43  ;;  %v2337_v40 = vld [vmem:[#allocation10 + $0x348] ss:$16 sps:$4 sm:$0xff]   ;;  %v2340_v43 = vld [vmem:[#allocation10 + $0x360] ss:$16 sps:$4 sm:$0xff]  }
  0xce   :  { %1397 = vmatprep.subr.bf16.mxu1 %v2267_v41  ;;  %v2342_v41 = vld [vmem:[#allocation10 + $0x364] ss:$16 sps:$4 sm:$0xff]  }
  0xd0   :  { %1318 = vmatpush1.bf16.msra.mxu0 %v2268_v45  ;;  %v2348_v45 = vld [vmem:[#allocation10 + $0x384] ss:$16 sps:$4 sm:$0xff]  }
  0xd1   :  { %1398 = vmatpush1.bf16.msra.mxu1 %v2265_v42  ;;  %1328 = vmatprep.subr.bf16.mxu0 %v2276_v47  ;;  %v2345_v42 = vld [vmem:[#allocation10 + $0x36c] ss:$16 sps:$4 sm:$0xff]   ;;  %v2346_v47 = vld [vmem:[#allocation10 + $0x380] ss:$16 sps:$4 sm:$0xff]  }
  0xd2   :  { %1399 = vmatprep.subr.bf16.mxu1 %v2273_v44  ;;  %v2343_v44 = vld [vmem:[#allocation10 + $0x368] ss:$16 sps:$4 sm:$0xff]  }
  0xd5   :  { %1400 = vmatpush1.bf16.msra.mxu1 %v2271_v46  ;;  %v2351_v46 = vld [vmem:[#allocation10 + $0x38c] ss:$16 sps:$4 sm:$0xff]  }
  0xd6   :  { %1410 = vmatprep.subr.bf16.mxu1 %v2279_v48  ;;  %v2349_v48 = vld [vmem:[#allocation10 + $0x388] ss:$16 sps:$4 sm:$0xff]  }
 0x166   :  { %v463_v49 = vpop.f32.mrb[0].mxu0 }
 0x167   :  { %v511_v50 = vmax.f32 %v463_v49, 0.0  ;;  %v465_v51 = vpop.f32.mrb[1].mxu0  ;;  %v2354_v49 = vld [vmem:[#allocation10 + $0x3a4] ss:$16 sps:$4 sm:$0xff]  }
 0x168   :  { %v512_v52 = vmax.f32 %v465_v51, 0.0  ;;  %v467_v53 = vpop.f32.mrb[2].mxu0  ;;  %v2352_v51 = vld [vmem:[#allocation10 + $0x3a0] ss:$16 sps:$4 sm:$0xff]  }
 0x169   :  { %v468_v54 = vpop.f32.mrb[3].mxu0  ;;  %v515_v58 = vpack.c.bf16 %v511_v50, %v511_v50  ;;  %v2357_v50 = vld [vmem:[#allocation10 + $0x3ac] ss:$16 sps:$4 sm:$0xff]   ;;  %v2360_v53 = vld [vmem:[#allocation10 + $0x3c4] ss:$16 sps:$4 sm:$0xff]  }
 0x16a   :  { %v516_v55 = vpack.c.bf16 %v512_v52, %v512_v52  ;;  %v2355_v52 = vld [vmem:[#allocation10 + $0x3a8] ss:$16 sps:$4 sm:$0xff]   ;;  %v2363_v54 = vld [vmem:[#allocation10 + $0x3cc] ss:$16 sps:$4 sm:$0xff]  }
 0x16b   :  { %v2722_v1 = vpop.f32.mrb[0].mxu1 }
 0x16c   :  { %1319 = vmatprep.mubr.bf16.mxu0 %v516_v55  ;;  %1401 = vmatprep.mubr.bf16.mxu1 %v516_v55  ;;  %v506_v4 = vpop.f32.mrb[1].mxu1  ;;  %v2358_v55 = vld [vmem:[#allocation10 + $0x3c0] ss:$16 sps:$4 sm:$0xff]  }
 0x16d   :  { %1320 = vmatmul.mubr.bf16.vlgmr.msra.gmra.mrb[4].mxu0 %v515_v58  ;;  %1402 = vmatmul.mubr.bf16.vlgmr.msra.gmra.mrb[4].mxu1 %v515_v58  ;;  %v514_v7 = vmax.f32 %v506_v4, 0.0  ;;  %v508_v8 = vpop.f32.mrb[2].mxu1  ;;  %v2369_v58 = vld [vmem:[#allocation10 + $0x3ec] ss:$16 sps:$4 sm:$0xff]  }
 0x16e   :  { %1329 = vmatpush1.bf16.msra.mxu0 %v2274_v56  ;;  %1411 = vmatpush1.bf16.msra.mxu1 %v2277_v57  ;;  %v509_v9 = vpop.f32.mrb[3].mxu1  ;;  %v2361_v56 = vld [vmem:[#allocation10 + $0x3c8] ss:$16 sps:$4 sm:$0xff]   ;;  %v2366_v57 = vld [vmem:[#allocation10 + $0x3e4] ss:$16 sps:$4 sm:$0xff]  }
 0x16f   :  { %1330 = vmatprep.subr.bf16.mxu0 %v2282_v59  ;;  %1412 = vmatprep.subr.bf16.mxu1 %v2285_v60  ;;  %v518_v10 = vpack.c.bf16 %v514_v7, %v514_v7  ;;  %v2364_v59 = vld [vmem:[#allocation10 + $0x3e0] ss:$16 sps:$4 sm:$0xff]   ;;  %v2367_v60 = vld [vmem:[#allocation10 + $0x3e8] ss:$16 sps:$4 sm:$0xff]  }
 0x170   :  { %v2374_v4 = vld [vmem:[#allocation11 + $0x48] sm:$0xff]   ;;  %v2379_v8 = vld [vmem:[#allocation11 + $0xd0] sm:$0xff]  }
 0x171   :  { %1360 = vmatprep.mubr.bf16.mxu0 %v518_v10  ;;  %1442 = vmatprep.mubr.bf16.mxu1 %v518_v10  ;;  %v2377_v7 = vld [vmem:[#allocation11 + $0x88] sm:$0xff]   ;;  %v2380_v9 = vld [vmem:[#allocation11 + $0x10] sm:$0xff]  }
 0x172   :  { %1331 = vmatpush1.bf16.msra.mxu0 %v2280_v61  ;;  %1413 = vmatpush1.bf16.msra.mxu1 %v2283_v62  ;;  %v513_v61 = vmax.f32 %v2722_v1, 0.0  ;;  %v2370_v62 = vld [vmem:[#allocation11 + $0x40] sm:$0xff]   ;;  %v2378_v1 = vld [vmem:[#allocation11 + $0x50] sm:$0xff]  }
 0x173   :  { %1332 = vmatprep.subr.bf16.mxu0 %v2288_v63  ;;  %1414 = vmatprep.subr.bf16.mxu1 %v2291_v0  ;;  %v2371_v63 = vld [vmem:[#allocation11 + $0xc0] sm:$0xff]   ;;  %v2381_v10 = vld [vmem:[#allocation11 + $0x90] sm:$0xff]  }
 0x174   :  { %v2372_v0 = vld [vmem:[#allocation11] sm:$0xff]  }
 0x176   :  { %1333 = vmatpush1.bf16.msra.mxu0 %v2286_v2  ;;  %1415 = vmatpush1.bf16.msra.mxu1 %v2289_v3  ;;  %v2373_v2 = vld [vmem:[#allocation11 + $0x80] sm:$0xff]   ;;  %v517_v3 = vpack.c.bf16 %v513_v61, %v513_v61 }
 0x177   :  { %1334 = vmatprep.subr.bf16.mxu0 %v2294_v5  ;;  %1416 = vmatprep.subr.bf16.mxu1 %v2297_v6  ;;  %v2375_v5 = vld [vmem:[#allocation11 + $0xc8] sm:$0xff]  }
 0x178   :  { %v2376_v6 = vld [vmem:[#allocation11 + $0x8] sm:$0xff]  }
 0x17a   :  { %1335 = vmatpush1.bf16.msra.mxu0 %v2292_v11  ;;  %1417 = vmatpush1.bf16.msra.mxu1 %v2295_v12  ;;  %v2382_v11 = vld [vmem:[#allocation11 + $0x58] sm:$0xff]  }
 0x17b   :  { %1336 = vmatprep.subr.bf16.mxu0 %v2300_v13  ;;  %1418 = vmatprep.subr.bf16.mxu1 %v2303_v14  ;;  %v2383_v12 = vld [vmem:[#allocation11 + $0xd8] sm:$0xff]  }
 0x17c   :  { %v2384_v13 = vld [vmem:[#allocation11 + $0x18] sm:$0xff]  }
 0x17d   :  { %v2385_v14 = vld [vmem:[#allocation11 + $0x98] sm:$0xff]  }
 0x17e   :  { %1337 = vmatpush1.bf16.msra.mxu0 %v2298_v15  ;;  %1419 = vmatpush1.bf16.msra.mxu1 %v2301_v16  ;;  %v2386_v15 = vld [vmem:[#allocation11 + $0x60] sm:$0xff]  }
 0x17f   :  { %1338 = vmatprep.subr.bf16.mxu0 %v2306_v17  ;;  %1420 = vmatprep.subr.bf16.mxu1 %v2309_v18  ;;  %v2387_v16 = vld [vmem:[#allocation11 + $0xe0] sm:$0xff]  }
 0x180   :  { %v2388_v17 = vld [vmem:[#allocation11 + $0x20] sm:$0xff]  }
 0x181   :  { %v2389_v18 = vld [vmem:[#allocation11 + $0xa0] sm:$0xff]  }
 0x182   :  { %1339 = vmatpush1.bf16.msra.mxu0 %v2304_v19  ;;  %1421 = vmatpush1.bf16.msra.mxu1 %v2307_v20  ;;  %v2390_v19 = vld [vmem:[#allocation11 + $0x68] sm:$0xff]  }
 0x183   :  { %1340 = vmatprep.subr.bf16.mxu0 %v2312_v21  ;;  %1422 = vmatprep.subr.bf16.mxu1 %v2315_v22  ;;  %v2391_v20 = vld [vmem:[#allocation11 + $0xe8] sm:$0xff]  }
 0x184   :  { %v2392_v21 = vld [vmem:[#allocation11 + $0x28] sm:$0xff]  }
 0x185   :  { %v2393_v22 = vld [vmem:[#allocation11 + $0xa8] sm:$0xff]  }
 0x186   :  { %1341 = vmatpush1.bf16.msra.mxu0 %v2310_v23  ;;  %1423 = vmatpush1.bf16.msra.mxu1 %v2313_v24  ;;  %v2394_v23 = vld [vmem:[#allocation11 + $0x70] sm:$0xff]  }
 0x187   :  { %1342 = vmatprep.subr.bf16.mxu0 %v2318_v25  ;;  %1424 = vmatprep.subr.bf16.mxu1 %v2321_v26  ;;  %v2395_v24 = vld [vmem:[#allocation11 + $0xf0] sm:$0xff]  }
 0x188   :  { %v2396_v25 = vld [vmem:[#allocation11 + $0x30] sm:$0xff]  }
 0x189   :  { %v2397_v26 = vld [vmem:[#allocation11 + $0xb0] sm:$0xff]  }
 0x18a   :  { %1343 = vmatpush1.bf16.msra.mxu0 %v2316_v27  ;;  %1425 = vmatpush1.bf16.msra.mxu1 %v2319_v28  ;;  %v2398_v27 = vld [vmem:[#allocation11 + $0x78] sm:$0xff]  }
 0x18b   :  { %1344 = vmatprep.subr.bf16.mxu0 %v2324_v29  ;;  %1426 = vmatprep.subr.bf16.mxu1 %v2327_v30  ;;  %v2399_v28 = vld [vmem:[#allocation11 + $0xf8] sm:$0xff]  }
 0x18c   :  { %v2400_v29 = vld [vmem:[#allocation11 + $0x38] sm:$0xff]  }
 0x18d   :  { %v2401_v30 = vld [vmem:[#allocation11 + $0xb8] sm:$0xff]  }
 0x18e   :  { %1345 = vmatpush1.bf16.msra.mxu0 %v2322_v31  ;;  %1427 = vmatpush1.bf16.msra.mxu1 %v2325_v32 }
 0x18f   :  { %1346 = vmatprep.subr.bf16.mxu0 %v2330_v33  ;;  %1428 = vmatprep.subr.bf16.mxu1 %v2333_v34 }
 0x192   :  { %1347 = vmatpush1.bf16.msra.mxu0 %v2328_v35  ;;  %1429 = vmatpush1.bf16.msra.mxu1 %v2331_v36 }
 0x193   :  { %1348 = vmatprep.subr.bf16.mxu0 %v2336_v37  ;;  %1430 = vmatprep.subr.bf16.mxu1 %v2339_v38 }
 0x196   :  { %1349 = vmatpush1.bf16.msra.mxu0 %v2334_v39  ;;  %1431 = vmatpush1.bf16.msra.mxu1 %v2337_v40 }
 0x197   :  { %1350 = vmatprep.subr.bf16.mxu0 %v2342_v41  ;;  %1432 = vmatprep.subr.bf16.mxu1 %v2345_v42 }
 0x19a   :  { %1351 = vmatpush1.bf16.msra.mxu0 %v2340_v43  ;;  %1433 = vmatpush1.bf16.msra.mxu1 %v2343_v44 }
 0x19b   :  { %1352 = vmatprep.subr.bf16.mxu0 %v2348_v45  ;;  %1434 = vmatprep.subr.bf16.mxu1 %v2351_v46 }
 0x19e   :  { %1353 = vmatpush1.bf16.msra.mxu0 %v2346_v47  ;;  %1435 = vmatpush1.bf16.msra.mxu1 %v2349_v48 }
 0x19f   :  { %1354 = vmatprep.subr.bf16.mxu0 %v2354_v49  ;;  %1436 = vmatprep.subr.bf16.mxu1 %v2357_v50  ;;  %v2021_v49 = vld [vmem:[%s2751_s6] ss:$0 sm:$0xff] }
 0x1a2   :  { %1355 = vmatpush1.bf16.msra.mxu0 %v2352_v51  ;;  %1437 = vmatpush1.bf16.msra.mxu1 %v2355_v52 }
 0x1a3   :  { %1356 = vmatprep.subr.bf16.mxu0 %v2360_v53  ;;  %1438 = vmatprep.subr.bf16.mxu1 %v2363_v54 }
 0x1a6   :  { %1357 = vmatpush1.bf16.msra.mxu0 %v2358_v55  ;;  %1439 = vmatpush1.bf16.msra.mxu1 %v2361_v56 }
 0x1a7   :  { %1358 = vmatprep.subr.bf16.mxu0 %v2366_v57  ;;  %1440 = vmatprep.subr.bf16.mxu1 %v2369_v58 }
 0x1aa   :  { %1359 = vmatpush1.bf16.msra.mxu0 %v2364_v59  ;;  %1441 = vmatpush1.bf16.msra.mxu1 %v2367_v60 }
 0x1ab   :  { %2054 = vmatprep.subr.bf16.mxu0 %v2370_v62  ;;  %2076 = vmatprep.subr.bf16.mxu1 %v2371_v63 }
 0x1ad   :  { %1361 = vmatmul.mubr.bf16.vlgmr.msra.gmra.mrb[4].mxu0 %v517_v3  ;;  %1443 = vmatmul.mubr.bf16.vlgmr.msra.gmra.mrb[4].mxu1 %v517_v3 }
 0x1ae   :  { %2055 = vmatpush3.bf16.msra.mxu0 %v2372_v0  ;;  %2077 = vmatpush3.bf16.msra.mxu1 %v2373_v2 }
 0x1af   :  { %2056 = vmatprep.subr.bf16.mxu0 %v2374_v4  ;;  %2078 = vmatprep.subr.bf16.mxu1 %v2375_v5 }
 0x1b2   :  { %2057 = vmatpush3.bf16.msra.mxu0 %v2376_v6  ;;  %2079 = vmatpush3.bf16.msra.mxu1 %v2377_v7 }
 0x1b3   :  { %2058 = vmatprep.subr.bf16.mxu0 %v2378_v1  ;;  %2080 = vmatprep.subr.bf16.mxu1 %v2379_v8  ;;  %v1816_v8 = vld [vmem:[%s2752_s7] sm:$0xff] }
 0x1b6   :  { %2059 = vmatpush3.bf16.msra.mxu0 %v2380_v9  ;;  %2081 = vmatpush3.bf16.msra.mxu1 %v2381_v10 }
 0x1b7   :  { %2060 = vmatprep.subr.bf16.mxu0 %v2382_v11  ;;  %2082 = vmatprep.subr.bf16.mxu1 %v2383_v12 }
 0x1ba   :  { %2061 = vmatpush3.bf16.msra.mxu0 %v2384_v13  ;;  %2083 = vmatpush3.bf16.msra.mxu1 %v2385_v14 }
 0x1bb   :  { %2062 = vmatprep.subr.bf16.mxu0 %v2386_v15  ;;  %2084 = vmatprep.subr.bf16.mxu1 %v2387_v16 }
 0x1be   :  { %2063 = vmatpush3.bf16.msra.mxu0 %v2388_v17  ;;  %2085 = vmatpush3.bf16.msra.mxu1 %v2389_v18 }
 0x1bf   :  { %2064 = vmatprep.subr.bf16.mxu0 %v2390_v19  ;;  %2086 = vmatprep.subr.bf16.mxu1 %v2391_v20 }
 0x1c2   :  { %2065 = vmatpush3.bf16.msra.mxu0 %v2392_v21  ;;  %2087 = vmatpush3.bf16.msra.mxu1 %v2393_v22 }
 0x1c3   :  { %2066 = vmatprep.subr.bf16.mxu0 %v2394_v23  ;;  %2088 = vmatprep.subr.bf16.mxu1 %v2395_v24 }
 0x1c6   :  { %2067 = vmatpush3.bf16.msra.mxu0 %v2396_v25  ;;  %2089 = vmatpush3.bf16.msra.mxu1 %v2397_v26 }
 0x1c7   :  { %2068 = vmatprep.subr.bf16.mxu0 %v2398_v27  ;;  %2090 = vmatprep.subr.bf16.mxu1 %v2399_v28 }
 0x1ca   :  { %2069 = vmatpush3.bf16.msra.mxu0 %v2400_v29  ;;  %2091 = vmatpush3.bf16.msra.mxu1 %v2401_v30 }
 0x280   :  { %v1362_v31 = vpop.f32.mrb[4].mxu0  ;;  %v1444_v32 = vpop.f32.mrb[4].mxu1 }
 0x281   :  { %v1451_v33 = vmax.f32 %v1362_v31, 0.0  ;;  %v1453_v34 = vmax.f32 %v1444_v32, 0.0  ;;  %v1364_v35 = vpop.f32.mrb[5].mxu0  ;;  %v1446_v36 = vpop.f32.mrb[5].mxu1 }
 0x282   :  { %v1452_v37 = vmax.f32 %v1364_v35, 0.0  ;;  %v1454_v38 = vmax.f32 %v1446_v36, 0.0  ;;  %v1366_v39 = vpop.f32.mrb[6].mxu0  ;;  %v1448_v40 = vpop.f32.mrb[6].mxu1 }
 0x283   :  { %v1367_v41 = vpop.f32.mrb[7].mxu0  ;;  %v1449_v42 = vpop.f32.mrb[7].mxu1  ;;  %v1455_v45 = vpack.c.bf16 %v1451_v33, %v1451_v33  ;;  %v1457_v46 = vpack.c.bf16 %v1453_v34, %v1453_v34 }
 0x284   :  { %v1456_v43 = vpack.c.bf16 %v1452_v37, %v1452_v37  ;;  %v1458_v44 = vpack.c.bf16 %v1454_v38, %v1454_v38 }
 0x286   :  { %1754 = vmatprep.mubr.bf16.mxu0 %v1456_v43  ;;  %1794 = vmatprep.mubr.bf16.mxu1 %v1458_v44 }
 0x287   :  { %1755 = vmatmul.mubr.bf16.vlgmr.msra.gmra.mrb[8].mxu0 %v1455_v45  ;;  %1795 = vmatmul.mubr.bf16.vlgmr.msra.gmra.mrb[8].mxu1 %v1457_v46 }
 0x35a   :  { %v2070_v47 = vpop.f32.mrb[8].mxu0  ;;  %v2092_v48 = vpop.f32.mrb[8].mxu1 }
 0x35b   :  { %v2071_v50 = vpop.f32.mrb[9].mxu0  ;;  %v2093_v51 = vpop.f32.mrb[9].mxu1 }
 0x35c   :  { %v2072_v52 = vadd.f32 %v2071_v50, %v2070_v47  ;;  %v2094_v53 = vadd.f32 %v2093_v51, %v2092_v48  ;;  %v2073_v54 = vpop.f32.mrb[10].mxu0  ;;  %v2095_v55 = vpop.f32.mrb[10].mxu1 }
 0x35d   :  { %v2074_v56 = vpop.f32.mrb[11].mxu0  ;;  %v2096_v57 = vpop.f32.mrb[11].mxu1 }
 0x35e   :  { %v1757_v58 = vadd.f32 %v2072_v52, %v2021_v49 }
 0x360   :  { %v1797_v59 = vadd.f32 %v2094_v53, %v1757_v58 }
 0x362   :  { %v1803_v60 = vmin.f32 %v1797_v59, 20.0  ;;  %vm1802_vm5 = vcmp.gt.f32.partialorder %v1797_v59, 20.0 }
 0x364   :  { %v1804_v61 = vmul.f32 1.442695, %v1803_v60 }
 0x366   :  { %2402 = vpow2.f32 %v1804_v61 }
 0x370   :  { %v2403_v62 = vpop.eup %2402 }
 0x371   :  { %v1806_v63 = vadd.f32 1.0, %v2403_v62  ;;  %v1809_v0 = vmul.f32 -0.5, %v2403_v62  ;;  %v1812_v3 = vand.u32 2147483647, %v2403_v62 }
 0x373   :  { %2404 = vlog2.f32 %v1806_v63  ;;  %v1810_v2 = vadd.f32 1.0, %v1809_v0  ;;  %vm1813_vm4 = vcmp.lt.f32.partialorder %v1812_v3, 0.0004427343 }
 0x375   :  { %v1811_v6 = vmul.f32 %v2403_v62, %v1810_v2 }
 0x37d   :  { %v2405_v4 = vpop.eup %2404 }
 0x37e   :  { %v1808_v5 = vmul.f32 0.6931472, %v2405_v4 }
 0x380   :  { %v1814_v7 = vsel %vm1813_vm4, %v1811_v6, %v1808_v5 }
 0x381   :  { %v1815_v1 = vsel %vm1802_vm5, %v1797_v59, %v1814_v7 }
 0x382   :  { %1818 = vrot.lane.b32.xlu0 %v1815_v1, %s2578_s4 }
 0x386   :  { %1824 = vrot.lane.b32.xlu0 %v1797_v59, %s2578_s4 }
 0x3f4   :  { %v1819_v9 = vpop.permute.xlu0 %1818 }
 0x3f5   :  { %v1821_v10 = vmul.f32 %v1819_v9, %v1816_v8  ;;  %1830 = vst.msk [vmem:[#allocation13 + $0x8] sm:$0xff] %vm1827_vm6, %v1819_v9 }
 0x3f7   :  { %v1822_v11 = vadd.f32 %v1821_v10, %v1797_v59 }
 0x3f8   :  { %v1825_v12 = vpop.permute.xlu0 %1824 }
 0x3f9   :  { %v1828_v13 = vsel %vm1827_vm6, %v1822_v11, %v1825_v12 }
 0x3fa   :  { %1829 = vst [vmem:[#allocation13] sm:$0xff] %v1828_v13 }
 0x3fb   :  { %2549 = shalt.err (!%p2546_p10)
}
 0x3fc   :  { %s2550_s14 = scalar_lea.hbm %s2753_s8, 256 }
 0x3fd   :  { %p2551_p11 = scmp.ne.s32.totalorder %s2753_s8, %s2550_s14  ;;  %p2554_p12 = scmp.lt.u32.totalorder %s2550_s14, %s2753_s8 }
 0x3ff   :  { %p2556_p13 = pnand %p2554_p12, %p2551_p11 }
 0x401   :  { %2559 = shalt.err (!%p2556_p13)
}
 0x402   :  { %1840 = dma.vmem_to_hbm [thread:$0]  %s1838_s11, 256, %s2753_s8, [#allocation4]  }
 0x403   :  { %2568 = dma.done.wait [#allocation4], 256  }
 0x404   :  { %2569 = vsyncadd [#allocation4], 4294967040 }
 0x405   :  { %1844 = vsyncpa [#allocation3], 1 }
 0x406   :  { %1845 = vsyncpa [#allocation6], 1 }
 0x407   :  { %1846 = vsyncpa [#allocation9], 1 }
 0x408   :  { %1847 = vsyncpa [#allocation12], 1 }
 0x409   :  { %1848 = vsyncpa [#allocation4], 1 }

</bundles_post_ra>
